<compile_context>
chip_gen: v6e
topology: v6e:2x2x1
jax: 0.10.0
libtpu: 0.0.40
codegen_flags: <defaults>
</compile_context>

<pallas_src>
import jax
import jax.numpy as jnp
from jax.experimental import pallas as pl
from jax.experimental.pallas import tpu as pltpu

FILTER_ORDER = 6
NUM_COEFFS = FILTER_ORDER + 1           # 7 adapted Chebyshev coefficients
LANES = 128
MAX_BLOCK_ROWS = 512                    # 512*128*4B = 256 KiB per tile

# golden_036 pattern, truncated to filter_order + 1 coefficients
GOLDEN_036 = [1.0, -0.36, 0.1296, -0.22, 0.1564, -0.088, 0.0548, -0.0339]
BASE_COEFFS = jnp.asarray(GOLDEN_036[:NUM_COEFFS], dtype=jnp.float32)


def cheb_filter_kernel(scal_ref, x_ref, o_ref):
    """scal_ref: SMEM f32[1 + NUM_COEFFS] = [inv_max, c0, ..., c6]
       x_ref/o_ref: VMEM f32[block_rows, 128] lane-dense eigenvalue slabs."""
    inv_max = scal_ref[0]
    ev = x_ref[...]
    x = 2.0 * (ev * inv_max) - 1.0                       # rescale to [-1, 1]

    # Chebyshev recurrence, fully unrolled (static python loop).
    result = scal_ref[1] + scal_ref[2] * x               # c0*T0 + c1*T1
    t_prev = jnp.ones_like(x)
    t_curr = x
    for i in range(2, NUM_COEFFS):
        t_next = 2.0 * x * t_curr - t_prev
        result = result + scal_ref[1 + i] * t_next
        t_prev, t_curr = t_curr, t_next

    o_ref[...] = jnp.exp(-jnp.minimum(jnp.abs(result), 10.0)) + 1e-6


def adaptive_golden_filter(eigenvalues, scale_factors, bias_terms,
                           golden_ratio_delta, base_coeffs=BASE_COEFFS):
    eigenvalues = eigenvalues.astype(jnp.float32)
    n = eigenvalues.shape[0]

    # ---- tiny parameter adaptation (O(7) work, done outside the kernel) ----
    adaptive_ratio = 0.36 + 0.1 * jnp.tanh(golden_ratio_delta)
    scale_constrained = 0.5 + 0.5 * jax.nn.sigmoid(scale_factors)
    bias_constrained = 0.1 * jnp.tanh(bias_terms)
    adapted = scale_constrained * base_coeffs + bias_constrained
    adapted = adapted.at[1].set(-adaptive_ratio)

    # Global max hoisted out of the kernel (tiling-safe); reciprocal once.
    max_ev = jnp.max(eigenvalues) + 1e-8
    inv_max = 1.0 / max_ev
    scalars = jnp.concatenate(
        [jnp.reshape(inv_max, (1,)), adapted]).astype(jnp.float32)   # (8,)

    # ---- lane-dense re-layout: (N,) -> (rows_padded, 128) ----
    rows = -(-n // LANES)
    block_rows = rows if rows <= MAX_BLOCK_ROWS else MAX_BLOCK_ROWS
    rows_padded = -(-rows // block_rows) * block_rows
    n_padded = rows_padded * LANES
    ev_padded = jnp.zeros((n_padded,), jnp.float32).at[:n].set(eigenvalues)
    ev2d = ev_padded.reshape(rows_padded, LANES)

    grid = (rows_padded // block_rows,)

    out2d = pl.pallas_call(
        cheb_filter_kernel,
        out_shape=jax.ShapeDtypeStruct((rows_padded, LANES), jnp.float32),
        grid=grid,
        in_specs=[
            pl.BlockSpec((1 + NUM_COEFFS,), lambda i: (0,),
                         memory_space=pltpu.MemorySpace.SMEM),
            pl.BlockSpec((block_rows, LANES), lambda i: (i, 0)),
        ],
        out_specs=pl.BlockSpec((block_rows, LANES), lambda i: (i, 0)),
        compiler_params=pltpu.CompilerParams(
            dimension_semantics=("parallel",)),
    )(scalars, ev2d)

    return out2d.reshape(n_padded)[:n]


def _reference(eigenvalues, scale_factors, bias_terms, golden_ratio_delta,
               base_coeffs=BASE_COEFFS):
    """Pure-JAX reference mirroring the PyTorch forward exactly."""
    eigenvalues = eigenvalues.astype(jnp.float32)
    adaptive_ratio = 0.36 + 0.1 * jnp.tanh(golden_ratio_delta)
    scale_constrained = 0.5 + 0.5 * jax.nn.sigmoid(scale_factors)
    bias_constrained = 0.1 * jnp.tanh(bias_terms)
    coeffs = scale_constrained * base_coeffs + bias_constrained
    coeffs = coeffs.at[1].set(-adaptive_ratio)
    max_ev = jnp.max(eigenvalues) + 1e-8
    x = 2.0 * (eigenvalues / max_ev) - 1.0
    result = coeffs[0] * jnp.ones_like(x)
    t_prev, t_curr = jnp.ones_like(x), x
    result = result + coeffs[1] * t_curr
    for i in range(2, NUM_COEFFS):
        t_next = 2.0 * x * t_curr - t_prev
        result = result + coeffs[i] * t_next
        t_prev, t_curr = t_curr, t_next
    return jnp.exp(-jnp.minimum(jnp.abs(result), 10.0)) + 1e-6


if __name__ == "__main__":
    key = jax.random.PRNGKey(0)
    k_ev, k_sc, k_bi, k_de, k_ev2 = jax.random.split(key, 5)

    # Learnable parameters (perturbed from their PyTorch init for a non-trivial check)
    scale_factors = (jnp.ones((NUM_COEFFS,), jnp.float32)
                     + 0.3 * jax.random.normal(k_sc, (NUM_COEFFS,), jnp.float32))
    bias_terms = 0.3 * jax.random.normal(k_bi, (NUM_COEFFS,), jnp.float32)
    golden_ratio_delta = 0.2 * jax.random.normal(k_de, (), jnp.float32)

    # Small case: N not a multiple of 128 (exercises padding), single grid step.
    ev_small = jax.random.uniform(k_ev, (1000,), jnp.float32) * 2.0
    out_small = jax.block_until_ready(
        adaptive_golden_filter(ev_small, scale_factors, bias_terms, golden_ratio_delta))
    ref_small = _reference(ev_small, scale_factors, bias_terms, golden_ratio_delta)
    assert out_small.shape == (1000,)
    assert jnp.allclose(out_small, ref_small, atol=1e-5, rtol=1e-5)

    # Larger case: exercises grid > 1 (multiple row blocks, pipelined).
    ev_big = jax.random.uniform(k_ev2, (70000,), jnp.float32) * 2.0
    out_big = jax.block_until_ready(
        adaptive_golden_filter(ev_big, scale_factors, bias_terms, golden_ratio_delta))
    ref_big = _reference(ev_big, scale_factors, bias_terms, golden_ratio_delta)
    assert out_big.shape == (70000,)
    assert jnp.allclose(out_big, ref_big, atol=1e-5, rtol=1e-5)

    print("KERNEL_OK")
</pallas_src>

<mosaic_0001>
module attributes {stable_mosaic.version = 11 : i64} {
  func.func @cheb_filter_kernel(%arg0: i32, %arg1: memref<8xf32, #tpu.memory_space<smem>>, %arg2: memref<8x128xf32, #tpu.memory_space<vmem>>, %arg3: memref<8x128xf32, #tpu.memory_space<vmem>>) attributes {dimension_semantics = [#tpu.dimension_semantics<parallel>], iteration_bounds = array<i64: 1>, scalar_prefetch = 0 : i64, scratch_operands = 0 : i64, tpu.core_type = #tpu.core_type<tc>, window_params = [{transform_indices = @transform_0, window_bounds = array<i64: 8>}, {transform_indices = @transform_1, window_bounds = array<i64: 8, 128>}, {transform_indices = @transform_2, window_bounds = array<i64: 8, 128>}]} {
    %c0 = arith.constant 0 : index
    %0 = memref.load %arg1[%c0] : memref<8xf32, #tpu.memory_space<smem>>
    %c0_0 = arith.constant 0 : index
    %c0_1 = arith.constant 0 : index
    %1 = vector.load %arg2[%c0_0, %c0_1] : memref<8x128xf32, #tpu.memory_space<vmem>>, vector<8x128xf32>
    %2 = vector.broadcast %0 : f32 to vector<8x128xf32>
    %3 = arith.mulf %1, %2 : vector<8x128xf32>
    %cst = arith.constant 2.000000e+00 : f32
    %4 = vector.broadcast %cst : f32 to vector<8x128xf32>
    %5 = arith.mulf %4, %3 : vector<8x128xf32>
    %cst_2 = arith.constant 1.000000e+00 : f32
    %6 = vector.broadcast %cst_2 : f32 to vector<8x128xf32>
    %7 = arith.subf %5, %6 : vector<8x128xf32>
    %c1 = arith.constant 1 : index
    %8 = memref.load %arg1[%c1] : memref<8xf32, #tpu.memory_space<smem>>
    %c2 = arith.constant 2 : index
    %9 = memref.load %arg1[%c2] : memref<8xf32, #tpu.memory_space<smem>>
    %10 = vector.broadcast %9 : f32 to vector<8x128xf32>
    %11 = arith.mulf %10, %7 : vector<8x128xf32>
    %12 = vector.broadcast %8 : f32 to vector<8x128xf32>
    %13 = arith.addf %12, %11 : vector<8x128xf32>
    %cst_3 = arith.constant 1.000000e+00 : f32
    %14 = vector.broadcast %cst_3 : f32 to vector<8x128xf32>
    %cst_4 = arith.constant 2.000000e+00 : f32
    %15 = vector.broadcast %cst_4 : f32 to vector<8x128xf32>
    %16 = arith.mulf %15, %7 : vector<8x128xf32>
    %17 = arith.mulf %16, %7 : vector<8x128xf32>
    %18 = arith.subf %17, %14 : vector<8x128xf32>
    %c3 = arith.constant 3 : index
    %19 = memref.load %arg1[%c3] : memref<8xf32, #tpu.memory_space<smem>>
    %20 = vector.broadcast %19 : f32 to vector<8x128xf32>
    %21 = arith.mulf %20, %18 : vector<8x128xf32>
    %22 = arith.addf %13, %21 : vector<8x128xf32>
    %cst_5 = arith.constant 2.000000e+00 : f32
    %23 = vector.broadcast %cst_5 : f32 to vector<8x128xf32>
    %24 = arith.mulf %23, %7 : vector<8x128xf32>
    %25 = arith.mulf %24, %18 : vector<8x128xf32>
    %26 = arith.subf %25, %7 : vector<8x128xf32>
    %c4 = arith.constant 4 : index
    %27 = memref.load %arg1[%c4] : memref<8xf32, #tpu.memory_space<smem>>
    %28 = vector.broadcast %27 : f32 to vector<8x128xf32>
    %29 = arith.mulf %28, %26 : vector<8x128xf32>
    %30 = arith.addf %22, %29 : vector<8x128xf32>
    %cst_6 = arith.constant 2.000000e+00 : f32
    %31 = vector.broadcast %cst_6 : f32 to vector<8x128xf32>
    %32 = arith.mulf %31, %7 : vector<8x128xf32>
    %33 = arith.mulf %32, %26 : vector<8x128xf32>
    %34 = arith.subf %33, %18 : vector<8x128xf32>
    %c5 = arith.constant 5 : index
    %35 = memref.load %arg1[%c5] : memref<8xf32, #tpu.memory_space<smem>>
    %36 = vector.broadcast %35 : f32 to vector<8x128xf32>
    %37 = arith.mulf %36, %34 : vector<8x128xf32>
    %38 = arith.addf %30, %37 : vector<8x128xf32>
    %cst_7 = arith.constant 2.000000e+00 : f32
    %39 = vector.broadcast %cst_7 : f32 to vector<8x128xf32>
    %40 = arith.mulf %39, %7 : vector<8x128xf32>
    %41 = arith.mulf %40, %34 : vector<8x128xf32>
    %42 = arith.subf %41, %26 : vector<8x128xf32>
    %c6 = arith.constant 6 : index
    %43 = memref.load %arg1[%c6] : memref<8xf32, #tpu.memory_space<smem>>
    %44 = vector.broadcast %43 : f32 to vector<8x128xf32>
    %45 = arith.mulf %44, %42 : vector<8x128xf32>
    %46 = arith.addf %38, %45 : vector<8x128xf32>
    %cst_8 = arith.constant 2.000000e+00 : f32
    %47 = vector.broadcast %cst_8 : f32 to vector<8x128xf32>
    %48 = arith.mulf %47, %7 : vector<8x128xf32>
    %49 = arith.mulf %48, %42 : vector<8x128xf32>
    %50 = arith.subf %49, %34 : vector<8x128xf32>
    %c7 = arith.constant 7 : index
    %51 = memref.load %arg1[%c7] : memref<8xf32, #tpu.memory_space<smem>>
    %52 = vector.broadcast %51 : f32 to vector<8x128xf32>
    %53 = arith.mulf %52, %50 : vector<8x128xf32>
    %54 = arith.addf %46, %53 : vector<8x128xf32>
    %55 = math.absf %54 : vector<8x128xf32>
    %cst_9 = arith.constant 1.000000e+01 : f32
    %56 = vector.broadcast %cst_9 : f32 to vector<8x128xf32>
    %57 = arith.minimumf %55, %56 : vector<8x128xf32>
    %cst_10 = arith.constant 0.000000e+00 : f32
    %58 = vector.broadcast %cst_10 : f32 to vector<8x128xf32>
    %59 = arith.subf %58, %57 : vector<8x128xf32>
    %60 = math.exp %59 : vector<8x128xf32>
    %cst_11 = arith.constant 9.99999997E-7 : f32
    %61 = vector.broadcast %cst_11 : f32 to vector<8x128xf32>
    %62 = arith.addf %60, %61 : vector<8x128xf32>
    %c0_12 = arith.constant 0 : index
    %c0_13 = arith.constant 0 : index
    %63 = vector.load %arg3[%c0_12, %c0_13] : memref<8x128xf32, #tpu.memory_space<vmem>>, vector<8x128xf32>
    tpu.vector_store %arg3[%c0_12, %c0_13], %62 {strides = array<i32>} : memref<8x128xf32, #tpu.memory_space<vmem>>, vector<8x128xf32>,
    return
  }
  func.func @transform_0(%arg0: i32) -> i32 {
    %c0_i32 = arith.constant 0 : i32
    %c0_i32_0 = arith.constant 0 : i32
    return %c0_i32 : i32
  }
  func.func @transform_1(%arg0: i32) -> (i32, i32) {
    %c0_i32 = arith.constant 0 : i32
    %c0_i32_0 = arith.constant 0 : i32
    return %arg0, %c0_i32 : i32, i32
  }
  func.func @transform_2(%arg0: i32) -> (i32, i32) {
    %c0_i32 = arith.constant 0 : i32
    %c0_i32_0 = arith.constant 0 : i32
    return %arg0, %c0_i32 : i32, i32
  }
}

</mosaic_0001>

<bundles_post_ra>
// kernel: tpu_custom_call.1
= control target key start
LH: loop header
LB: loop body
LE: loop exit
PB: predicated region body
PF: predicated region fallthrough
CT: control target
= control target key end

     0   :  { %7 = vsyncpa [#allocation5], 0  ;;  %s196_s0 = inlined_call_operand.hbm [shape: f32[8], index: 0, kind: input, shape index: {}]   ;;  %s197_s1 = inlined_call_operand.hbm [shape: f32[8,128], index: 1, kind: input, shape index: {}]   ;;  %s198_s2 = inlined_call_operand.hbm [shape: f32[8,128], index: 2, kind: output, shape index: {}]  }
   0x1   :  { %8 = vsyncpa [#allocation3], 0 }
   0x2   :  { %9 = vsyncpa [#allocation4], 0  ;;  %s169_s9 = smov [#allocation2]   ;;  %s170_s12 = smov [#allocation6]  }
   0x3   :  { %17 = dma.hbm_to_smem %s196_s0, 16, %s169_s9, [#allocation5]  }
   0x4   :  { %s24_s13 = sshll.u32 %s170_s12, 4  ;;  %s25_s13 = int_to_ptr.vmem [resolvable:$true] %s24_s13 }
   0x5   :  { %s131_s14 = scalar_lea.vmem %s25_s13, 128  ;;  %p136_p1 = scmp.lt.s32.totalorder %s25_s13, %s25_s13 }
   0x6   :  { %p132_p0 = scmp.ne.s32.totalorder %s25_s13, %s131_s14  ;;  %p137_p2 = scmp.lt.s32.totalorder %s131_s14, %s131_s14 }
   0x8   :  { %p138_p3 = por %p137_p2, %p136_p1 }
   0xa   :  { %p139_p4 = pnand %p138_p3, %p132_p0 }
   0xc   :  { %142 = shalt.err (!%p139_p4)
}
   0xd   :  { %27 = dma.hbm_to_vmem [thread:$0]  %s197_s1, 128, %s25_s13, [#allocation3]  }
   0xe   :  { %163 = dma.done.wait [#allocation5], 16  }
   0xf   :  { %164 = vsyncadd [#allocation5], 4294967280 }
  0x10   :  { %165 = dma.done.wait [#allocation3], 128  }
  0x11   :  { %166 = vsyncadd [#allocation3], 4294967168 }
  0x12   :  { %34 = sfence }
  0x13   :  { %s35_s0 = sld [smem:[#allocation2]]  ;;  %v36_v0 = vld [vmem:[#allocation6] sm:$0xff]  ;;  %s171_s23 = smov [#allocation7]  }
  0x14   :  { %s103_s17 = sld [smem:[#allocation2 + $0x2]]  ;;  %s91_s24 = sshll.u32 %s171_s23, 4  ;;  %s92_s24 = int_to_ptr.vmem [resolvable:$true] %s91_s24 }
  0x15   :  { %s102_s18 = sld [smem:[#allocation2 + $0x1]]  ;;  %s143_s25 = scalar_lea.vmem %s92_s24, 128 }
  0x16   :  { %s105_s19 = sld [smem:[#allocation2 + $0x3]]  ;;  %p144_p5 = scmp.ne.s32.totalorder %s92_s24, %s143_s25 }
  0x17   :  { %s106_s20 = sld [smem:[#allocation2 + $0x4]]  ;;  %p148_p6 = scmp.lt.s32.totalorder %s92_s24, %s92_s24 }
  0x18   :  { %s107_s1 = sld [smem:[#allocation2 + $0x5]]  ;;  %p149_p7 = scmp.lt.s32.totalorder %s143_s25, %s143_s25 }
  0x19   :  { %v37_v1 = vstv %s35_s0  ;;  %s108_s21 = sld [smem:[#allocation2 + $0x6]] }
  0x1a   :  { %v38_v2 = vmul.f32 %v37_v1, %v36_v0  ;;  %v43_v4 = vstv %s103_s17  ;;  %s109_s22 = sld [smem:[#allocation2 + $0x7]]  ;;  %p150_p8 = por %p149_p7, %p148_p6 }
  0x1b   :  { %v45_v8 = vstv %s102_s18 }
  0x1c   :  { %v39_v3 = vmul.f32 2.0, %v38_v2  ;;  %v51_v10 = vstv %s105_s19  ;;  %p151_p9 = pnand %p150_p8, %p144_p5 }
  0x1d   :  { %v57_v15 = vstv %s106_s20 }
  0x1e   :  { %v101_v5 = vadd.f32 -1.0, %v39_v3  ;;  %v63_v20 = vstv %s107_s1 }
  0x1f   :  { %v69_v25 = vstv %s108_s21 }
  0x20   :  { %v44_v6 = vmul.f32 %v101_v5, %v43_v4  ;;  %v47_v7 = vmul.f32 2.0, %v101_v5  ;;  %v75_v30 = vstv %s109_s22 }
  0x22   :  { %v48_v9 = vmul.f32 %v101_v5, %v47_v7  ;;  %v46_v11 = vadd.f32 %v45_v8, %v44_v6 }
  0x24   :  { %v104_v12 = vadd.f32 -1.0, %v48_v9 }
  0x26   :  { %v52_v13 = vmul.f32 %v104_v12, %v51_v10  ;;  %v54_v14 = vmul.f32 %v104_v12, %v47_v7 }
  0x28   :  { %v53_v16 = vadd.f32 %v52_v13, %v46_v11  ;;  %v55_v17 = vsub.f32 %v54_v14, %v101_v5 }
  0x2a   :  { %v58_v18 = vmul.f32 %v57_v15, %v55_v17  ;;  %v60_v19 = vmul.f32 %v55_v17, %v47_v7 }
  0x2c   :  { %v59_v21 = vadd.f32 %v58_v18, %v53_v16  ;;  %v61_v22 = vsub.f32 %v60_v19, %v104_v12 }
  0x2e   :  { %v64_v23 = vmul.f32 %v63_v20, %v61_v22  ;;  %v66_v24 = vmul.f32 %v61_v22, %v47_v7 }
  0x30   :  { %v65_v26 = vadd.f32 %v64_v23, %v59_v21  ;;  %v67_v27 = vsub.f32 %v66_v24, %v55_v17 }
  0x32   :  { %v70_v28 = vmul.f32 %v69_v25, %v67_v27  ;;  %v72_v29 = vmul.f32 %v67_v27, %v47_v7 }
  0x34   :  { %v71_v31 = vadd.f32 %v70_v28, %v65_v26  ;;  %v73_v32 = vsub.f32 %v72_v29, %v61_v22 }
  0x36   :  { %v76_v33 = vmul.f32 %v75_v30, %v73_v32 }
  0x38   :  { %v77_v34 = vadd.f32 %v76_v33, %v71_v31 }
  0x3a   :  { %v78_v35 = vand.u32 2147483647, %v77_v34 }
  0x3c   :  { %v79_v36 = vmin.f32 %v78_v35, 10.0 }
  0x3e   :  { %v80_v37 = vsub.f32 0.0, %v79_v36 }
  0x40   :  { %v81_v38 = vmul.f32 1.442695, %v80_v37 }
  0x42   :  { %113 = vpow2.f32 %v81_v38 }
  0x4f   :  { %v114_v39 = vpop.eup %113 }
  0x50   :  { %v83_v40 = vadd.f32 1e-06, %v114_v39 }
  0x52   :  { %84 = vst [vmem:[#allocation7] sm:$0xff] %v83_v40 }
  0x53   :  { %154 = shalt.err (!%p151_p9)
}
  0x54   :  { %94 = dma.vmem_to_hbm [thread:$0]  %s92_s24, 128, %s198_s2, [#allocation4]  }
  0x55   :  { %167 = dma.done.wait [#allocation4], 128  }
  0x56   :  { %168 = vsyncadd [#allocation4], 4294967168 }
  0x57   :  { %98 = vsyncpa [#allocation3], 1 }
  0x58   :  { %99 = vsyncpa [#allocation4], 1 }
  0x59   :  { %100 = vsyncpa [#allocation5], 1 }

</bundles_post_ra>
